<compile_context>
chip_gen: v7x
topology: tpu7x:2x2x1
jax: 0.10.0
libtpu: 0.0.40
codegen_flags: <defaults>
</compile_context>

<pallas_src>
import jax
import jax.numpy as jnp
from jax.experimental import pallas as pl
from jax.experimental.pallas import tpu as pltpu

EPS = 0.001


def _round_up(x, m):
    return (x + m - 1) // m * m


def _axis_weights(xq, grid_col, n):
    """Two-point interpolation weights for one table axis.

    xq:       (1, T)  queries on the lane axis.
    grid_col: (n, 1)  strictly DESCENDING grid values on the sublane axis.
    Returns   (n, T)  weight matrix; column l carries weight (1 - frac) on row
              arg-1 and frac on row arg, where grid[arg] <= x <= grid[arg-1].
              Clamping frac to [0, 1] reproduces both the torch input clamp and
              grid_sample's padding_mode='border'.
    """
    t = xq.shape[1]
    gt = (grid_col > xq).astype(jnp.float32)                      # (n, T)
    cnt = jnp.sum(gt, axis=0, keepdims=True)                      # #{grid > x}, (1, T)
    argc = jnp.clip(cnt, 1.0, float(n - 1)).astype(jnp.int32)     # bracket lower index
    iota = jax.lax.broadcasted_iota(jnp.int32, (n, t), 0)
    oh_hi = iota == (argc - 1)                                    # row arg-1  (grid >= x)
    oh_lo = iota == argc                                          # row arg    (grid <= x)
    v_hi = jnp.sum(jnp.where(oh_hi, grid_col, 0.0), axis=0, keepdims=True)
    v_lo = jnp.sum(jnp.where(oh_lo, grid_col, 0.0), axis=0, keepdims=True)
    # EUP approx reciprocal + one Newton refinement -> ~f32-exact, off the VALU path.
    d = v_hi - v_lo
    inv = pl.reciprocal(d, approx=True)
    inv = inv * (2.0 - d * inv)
    frac = jnp.clip((v_hi - xq) * inv, 0.0, 1.0)                  # (1, T)
    return jnp.where(oh_hi, 1.0 - frac, 0.0) + jnp.where(oh_lo, frac, 0.0)


def _grid_sample_kernel(x1_ref, x2_ref, g1_ref, g2_ref, yt_ref, out_ref):
    h = g1_ref.shape[0]
    w = g2_ref.shape[0]
    x1 = x1_ref[...]                                   # (1, T) queries (lane-dense)
    x2 = x2_ref[...]                                   # (1, T)
    w_r = _axis_weights(x1, g1_ref[...], h)            # (H, T) row weights
    w_c = _axis_weights(x2, g2_ref[...], w)            # (W, T) column weights
    # MXU contraction of the resident table against the row weights.
    # Precision.HIGHEST keeps it f32-accurate (matches torch's f32 gather).
    tmp = jnp.dot(yt_ref[...], w_r,
                  preferred_element_type=jnp.float32,
                  precision=jax.lax.Precision.HIGHEST)            # (W, T)
    out_ref[...] = jnp.sum(tmp * w_c, axis=0, keepdims=True)      # (1, T) lane-dense


def grid_sample_forward(x1q, x2q, g1, g2, y, *, tile_l=512):
    """x1q, x2q: (L,) queries; g1: (H,), g2: (W,) strictly descending grids;
    y: (H, W) lookup table.  Returns (sampled values (L,), regu scalar)."""
    x1q = x1q.astype(jnp.float32)
    x2q = x2q.astype(jnp.float32)
    g1 = g1.astype(jnp.float32)
    g2 = g2.astype(jnp.float32)
    y = y.astype(jnp.float32)
    L = x1q.shape[0]
    H, W = y.shape

    # Regularizer: cheap O(L) elementwise + mean, done in plain JAX (fuses with
    # the pad/reshape below), so the kernel needs no padded-lane masking.
    # TODO(synk): as in the torch module, this divides by mean(x) and blows up
    # if the query batch averages near zero.
    def _regu(x, g):
        return (jnp.mean(jax.nn.relu(x - g[0] - EPS) + jax.nn.relu(g[-1] + EPS - x))
                / jnp.mean(x) / 2.0)

    regu = _regu(x1q, g1) + _regu(x2q, g2)

    # Lane-dense query layout: pad L up to a multiple of the tile and put the
    # queries on the lane axis.  Padded lanes compute harmless in-range samples
    # and are sliced off below.
    tl = _round_up(min(tile_l, _round_up(max(L, 1), 128)), 128)
    l_pad = _round_up(L, tl)
    x1p = jnp.pad(x1q, (0, l_pad - L)).reshape(1, l_pad)
    x2p = jnp.pad(x2q, (0, l_pad - L)).reshape(1, l_pad)
    g1c = g1.reshape(H, 1)
    g2c = g2.reshape(W, 1)
    y_t = y.T                       # (W, H): LHS of the in-kernel MXU contraction

    # NOTE: for very large tables (y bigger than ~20-30 MiB, relevant on v7x's
    # 64 MiB VMEM) tile y over H with an extra grid axis + accumulator and/or
    # raise vmem_limit_bytes; at these sizes the whole table stays resident.
    out = pl.pallas_call(
        _grid_sample_kernel,
        out_shape=jax.ShapeDtypeStruct((1, l_pad), jnp.float32),
        grid_spec=pltpu.PrefetchScalarGridSpec(
            num_scalar_prefetch=0,
            grid=(l_pad // tl,),
            in_specs=[
                pl.BlockSpec((1, tl), lambda i: (0, i)),   # x1 queries (streamed)
                pl.BlockSpec((1, tl), lambda i: (0, i)),   # x2 queries (streamed)
                pl.BlockSpec((H, 1), lambda i: (0, 0)),    # grid 1 (resident)
                pl.BlockSpec((W, 1), lambda i: (0, 0)),    # grid 2 (resident)
                pl.BlockSpec((W, H), lambda i: (0, 0)),    # y^T    (resident)
            ],
            out_specs=pl.BlockSpec((1, tl), lambda i: (0, i)),
        ),
        compiler_params=pltpu.CompilerParams(
            dimension_semantics=("parallel",),   # lets v7x shard steps over 2 TCs
        ),
    )(x1p, x2p, g1c, g2c, y_t)
    return out[0, :L], regu


# ---- pure-JAX reference (mirrors the torch op chain) for verification ----------
def reference_forward(x1q, x2q, g1, g2, y):
    H, W = y.shape

    def regu_term(x, x0):
        return (jnp.mean(jax.nn.relu(x - x0[0] - EPS)
                         + jax.nn.relu(x0[-1] + EPS - x))
                / jnp.mean(x) / 2.0)

    def gen_index(x, x0):
        N = x0.shape[0]
        step = (N - 1.0) / 2.0
        xc = jnp.clip(x, x0[-1], x0[0])
        arg = jnp.argmin(jnp.abs(xc[:, None] - x0[None, :]), axis=1).astype(jnp.int32)
        arg = jnp.where(x0[arg] > xc, arg + 1, arg)
        argm1 = arg - 1
        v_hi = x0[jnp.where(argm1 < 0, N - 1, argm1)]   # torch negative-index wrap
        v_lo = x0[arg]
        return (v_hi - xc) / (v_hi - v_lo) / step + argm1.astype(jnp.float32) / step - 1.0

    regu = regu_term(x1q, g1) + regu_term(x2q, g2)
    gy = gen_index(x1q, g1)
    gx = gen_index(x2q, g2)
    iy = jnp.clip((gy + 1.0) * 0.5 * (H - 1), 0.0, H - 1.0)
    ix = jnp.clip((gx + 1.0) * 0.5 * (W - 1), 0.0, W - 1.0)
    iy0 = jnp.floor(iy).astype(jnp.int32)
    ix0 = jnp.floor(ix).astype(jnp.int32)
    wy = iy - iy0
    wx = ix - ix0
    iy1 = jnp.minimum(iy0 + 1, H - 1)
    ix1 = jnp.minimum(ix0 + 1, W - 1)
    out = (y[iy0, ix0] * (1 - wx) * (1 - wy) + y[iy0, ix1] * wx * (1 - wy)
           + y[iy1, ix0] * (1 - wx) * wy + y[iy1, ix1] * wx * wy)
    return out, regu


if __name__ == "__main__":
    # Deterministic synthetic "checkpoint" (replaces scio.loadmat):
    H, W, L = 16, 16, 300
    t1 = jnp.linspace(0.0, 1.0, H)
    t2 = jnp.linspace(0.0, 1.0, W)
    g1 = (2.5 - 2.0 * t1 ** 1.3).astype(jnp.float32)   # strictly descending, non-uniform
    g2 = (1.8 - 1.6 * t2 ** 0.8).astype(jnp.float32)   # strictly descending, non-uniform

    key = jax.random.PRNGKey(0)
    k_y, k_x1, k_x2 = jax.random.split(key, 3)
    y = jax.random.normal(k_y, (H, W), dtype=jnp.float32)
    # queries mostly in-range, some outside to exercise border clamp + regu
    x1q = jax.random.uniform(k_x1, (L,), minval=0.4, maxval=2.6, dtype=jnp.float32)
    x2q = jax.random.uniform(k_x2, (L,), minval=0.1, maxval=1.9, dtype=jnp.float32)

    # tile_l=128 -> 3 grid steps at L=300, exercising pipelining + tail padding.
    out, regu = grid_sample_forward(x1q, x2q, g1, g2, y, tile_l=128)
    jax.block_until_ready((out, regu))

    ref_out, ref_regu = reference_forward(x1q, x2q, g1, g2, y)
    assert out.shape == (L,)
    assert jnp.allclose(out, ref_out, rtol=1e-4, atol=1e-4), (out, ref_out)
    assert jnp.allclose(regu, ref_regu, rtol=1e-5, atol=1e-6), (regu, ref_regu)
    print("KERNEL_OK")
</pallas_src>

<mosaic_0001>
module attributes {stable_mosaic.version = 11 : i64} {
  func.func @_grid_sample_kernel(%arg0: i32, %arg1: memref<1x128xf32, #tpu.memory_space<vmem>>, %arg2: memref<1x128xf32, #tpu.memory_space<vmem>>, %arg3: memref<16x1xf32, #tpu.memory_space<vmem>>, %arg4: memref<16x1xf32, #tpu.memory_space<vmem>>, %arg5: memref<16x16xf32, #tpu.memory_space<vmem>>, %arg6: memref<1x128xf32, #tpu.memory_space<vmem>>) attributes {dimension_semantics = [#tpu.dimension_semantics<parallel>], iteration_bounds = array<i64: 3>, scalar_prefetch = 0 : i64, scratch_operands = 0 : i64, tpu.core_type = #tpu.core_type<tc>, window_params = [{transform_indices = @transform_0, window_bounds = array<i64: 1, 128>}, {transform_indices = @transform_1, window_bounds = array<i64: 1, 128>}, {pipeline_mode = #tpu.pipeline_mode<synchronous>, transform_indices = @transform_2, window_bounds = array<i64: 16, 1>}, {pipeline_mode = #tpu.pipeline_mode<synchronous>, transform_indices = @transform_3, window_bounds = array<i64: 16, 1>}, {pipeline_mode = #tpu.pipeline_mode<synchronous>, transform_indices = @transform_4, window_bounds = array<i64: 16, 16>}, {transform_indices = @transform_5, window_bounds = array<i64: 1, 128>}]} {
    %c0 = arith.constant 0 : index
    %c0_0 = arith.constant 0 : index
    %0 = vector.load %arg1[%c0, %c0_0] : memref<1x128xf32, #tpu.memory_space<vmem>>, vector<1x128xf32>
    %c0_1 = arith.constant 0 : index
    %c0_2 = arith.constant 0 : index
    %1 = vector.load %arg2[%c0_1, %c0_2] : memref<1x128xf32, #tpu.memory_space<vmem>>, vector<1x128xf32>
    %c0_3 = arith.constant 0 : index
    %c0_4 = arith.constant 0 : index
    %2 = vector.load %arg3[%c0_3, %c0_4] : memref<16x1xf32, #tpu.memory_space<vmem>>, vector<16x1xf32>
    %3 = vector.broadcast %2 : vector<16x1xf32> to vector<16x128xf32>
    %4 = vector.broadcast %0 : vector<1x128xf32> to vector<16x128xf32>
    %5 = arith.cmpf ogt, %3, %4 : vector<16x128xf32>
    %6 = arith.extui %5 : vector<16x128xi1> to vector<16x128xi32>
    %7 = arith.sitofp %6 : vector<16x128xi32> to vector<16x128xf32>
    %cst = arith.constant dense<0.000000e+00> : vector<128xf32>
    %8 = vector.multi_reduction <add>, %7, %cst [0] : vector<16x128xf32> to vector<128xf32>
    %9 = vector.shape_cast %8 : vector<128xf32> to vector<1x128xf32>
    %cst_5 = arith.constant 1.000000e+00 : f32
    %cst_6 = arith.constant 1.500000e+01 : f32
    %10 = vector.broadcast %cst_5 : f32 to vector<1x128xf32>
    %11 = arith.maximumf %10, %9 : vector<1x128xf32>
    %12 = vector.broadcast %cst_6 : f32 to vector<1x128xf32>
    %13 = arith.minimumf %12, %11 : vector<1x128xf32>
    %14 = arith.fptosi %13 : vector<1x128xf32> to vector<1x128xi32>
    %15 = tpu.iota {dimensions = array<i32: 0>} : vector<16x128xi32>
    %c1_i32 = arith.constant 1 : i32
    %16 = vector.broadcast %c1_i32 : i32 to vector<1x128xi32>
    %17 = arith.subi %14, %16 : vector<1x128xi32>
    %18 = vector.broadcast %17 : vector<1x128xi32> to vector<16x128xi32>
    %19 = arith.cmpi eq, %15, %18 : vector<16x128xi32>
    %20 = vector.broadcast %14 : vector<1x128xi32> to vector<16x128xi32>
    %21 = arith.cmpi eq, %15, %20 : vector<16x128xi32>
    %cst_7 = arith.constant 0.000000e+00 : f32
    %22 = vector.shape_cast %2 : vector<16x1xf32> to vector<16x1xf32>
    %23 = vector.broadcast %22 : vector<16x1xf32> to vector<16x128xf32>
    %24 = vector.broadcast %cst_7 : f32 to vector<16x128xf32>
    %25 = arith.select %19, %23, %24 : vector<16x128xi1>, vector<16x128xf32>
    %cst_8 = arith.constant dense<0.000000e+00> : vector<128xf32>
    %26 = vector.multi_reduction <add>, %25, %cst_8 [0] : vector<16x128xf32> to vector<128xf32>
    %27 = vector.shape_cast %26 : vector<128xf32> to vector<1x128xf32>
    %cst_9 = arith.constant 0.000000e+00 : f32
    %28 = vector.shape_cast %2 : vector<16x1xf32> to vector<16x1xf32>
    %29 = vector.broadcast %28 : vector<16x1xf32> to vector<16x128xf32>
    %30 = vector.broadcast %cst_9 : f32 to vector<16x128xf32>
    %31 = arith.select %21, %29, %30 : vector<16x128xi1>, vector<16x128xf32>
    %cst_10 = arith.constant dense<0.000000e+00> : vector<128xf32>
    %32 = vector.multi_reduction <add>, %31, %cst_10 [0] : vector<16x128xf32> to vector<128xf32>
    %33 = vector.shape_cast %32 : vector<128xf32> to vector<1x128xf32>
    %34 = arith.subf %27, %33 : vector<1x128xf32>
    %35 = tpu.reciprocal %34 {approx = true} : vector<1x128xf32> -> vector<1x128xf32>
    %36 = arith.mulf %34, %35 : vector<1x128xf32>
    %cst_11 = arith.constant 2.000000e+00 : f32
    %37 = vector.broadcast %cst_11 : f32 to vector<1x128xf32>
    %38 = arith.subf %37, %36 : vector<1x128xf32>
    %39 = arith.mulf %35, %38 : vector<1x128xf32>
    %40 = arith.subf %27, %0 : vector<1x128xf32>
    %41 = arith.mulf %40, %39 : vector<1x128xf32>
    %cst_12 = arith.constant 0.000000e+00 : f32
    %cst_13 = arith.constant 1.000000e+00 : f32
    %42 = vector.broadcast %cst_12 : f32 to vector<1x128xf32>
    %43 = arith.maximumf %42, %41 : vector<1x128xf32>
    %44 = vector.broadcast %cst_13 : f32 to vector<1x128xf32>
    %45 = arith.minimumf %44, %43 : vector<1x128xf32>
    %cst_14 = arith.constant 1.000000e+00 : f32
    %46 = vector.broadcast %cst_14 : f32 to vector<1x128xf32>
    %47 = arith.subf %46, %45 : vector<1x128xf32>
    %cst_15 = arith.constant 0.000000e+00 : f32
    %48 = vector.shape_cast %47 : vector<1x128xf32> to vector<1x128xf32>
    %49 = vector.broadcast %48 : vector<1x128xf32> to vector<16x128xf32>
    %50 = vector.broadcast %cst_15 : f32 to vector<16x128xf32>
    %51 = arith.select %19, %49, %50 : vector<16x128xi1>, vector<16x128xf32>
    %cst_16 = arith.constant 0.000000e+00 : f32
    %52 = vector.shape_cast %45 : vector<1x128xf32> to vector<1x128xf32>
    %53 = vector.broadcast %52 : vector<1x128xf32> to vector<16x128xf32>
    %54 = vector.broadcast %cst_16 : f32 to vector<16x128xf32>
    %55 = arith.select %21, %53, %54 : vector<16x128xi1>, vector<16x128xf32>
    %56 = arith.addf %51, %55 : vector<16x128xf32>
    %c0_17 = arith.constant 0 : index
    %c0_18 = arith.constant 0 : index
    %57 = vector.load %arg4[%c0_17, %c0_18] : memref<16x1xf32, #tpu.memory_space<vmem>>, vector<16x1xf32>
    %58 = vector.broadcast %57 : vector<16x1xf32> to vector<16x128xf32>
    %59 = vector.broadcast %1 : vector<1x128xf32> to vector<16x128xf32>
    %60 = arith.cmpf ogt, %58, %59 : vector<16x128xf32>
    %61 = arith.extui %60 : vector<16x128xi1> to vector<16x128xi32>
    %62 = arith.sitofp %61 : vector<16x128xi32> to vector<16x128xf32>
    %cst_19 = arith.constant dense<0.000000e+00> : vector<128xf32>
    %63 = vector.multi_reduction <add>, %62, %cst_19 [0] : vector<16x128xf32> to vector<128xf32>
    %64 = vector.shape_cast %63 : vector<128xf32> to vector<1x128xf32>
    %cst_20 = arith.constant 1.000000e+00 : f32
    %cst_21 = arith.constant 1.500000e+01 : f32
    %65 = vector.broadcast %cst_20 : f32 to vector<1x128xf32>
    %66 = arith.maximumf %65, %64 : vector<1x128xf32>
    %67 = vector.broadcast %cst_21 : f32 to vector<1x128xf32>
    %68 = arith.minimumf %67, %66 : vector<1x128xf32>
    %69 = arith.fptosi %68 : vector<1x128xf32> to vector<1x128xi32>
    %70 = tpu.iota {dimensions = array<i32: 0>} : vector<16x128xi32>
    %c1_i32_22 = arith.constant 1 : i32
    %71 = vector.broadcast %c1_i32_22 : i32 to vector<1x128xi32>
    %72 = arith.subi %69, %71 : vector<1x128xi32>
    %73 = vector.broadcast %72 : vector<1x128xi32> to vector<16x128xi32>
    %74 = arith.cmpi eq, %70, %73 : vector<16x128xi32>
    %75 = vector.broadcast %69 : vector<1x128xi32> to vector<16x128xi32>
    %76 = arith.cmpi eq, %70, %75 : vector<16x128xi32>
    %cst_23 = arith.constant 0.000000e+00 : f32
    %77 = vector.shape_cast %57 : vector<16x1xf32> to vector<16x1xf32>
    %78 = vector.broadcast %77 : vector<16x1xf32> to vector<16x128xf32>
    %79 = vector.broadcast %cst_23 : f32 to vector<16x128xf32>
    %80 = arith.select %74, %78, %79 : vector<16x128xi1>, vector<16x128xf32>
    %cst_24 = arith.constant dense<0.000000e+00> : vector<128xf32>
    %81 = vector.multi_reduction <add>, %80, %cst_24 [0] : vector<16x128xf32> to vector<128xf32>
    %82 = vector.shape_cast %81 : vector<128xf32> to vector<1x128xf32>
    %cst_25 = arith.constant 0.000000e+00 : f32
    %83 = vector.shape_cast %57 : vector<16x1xf32> to vector<16x1xf32>
    %84 = vector.broadcast %83 : vector<16x1xf32> to vector<16x128xf32>
    %85 = vector.broadcast %cst_25 : f32 to vector<16x128xf32>
    %86 = arith.select %76, %84, %85 : vector<16x128xi1>, vector<16x128xf32>
    %cst_26 = arith.constant dense<0.000000e+00> : vector<128xf32>
    %87 = vector.multi_reduction <add>, %86, %cst_26 [0] : vector<16x128xf32> to vector<128xf32>
    %88 = vector.shape_cast %87 : vector<128xf32> to vector<1x128xf32>
    %89 = arith.subf %82, %88 : vector<1x128xf32>
    %90 = tpu.reciprocal %89 {approx = true} : vector<1x128xf32> -> vector<1x128xf32>
    %91 = arith.mulf %89, %90 : vector<1x128xf32>
    %cst_27 = arith.constant 2.000000e+00 : f32
    %92 = vector.broadcast %cst_27 : f32 to vector<1x128xf32>
    %93 = arith.subf %92, %91 : vector<1x128xf32>
    %94 = arith.mulf %90, %93 : vector<1x128xf32>
    %95 = arith.subf %82, %1 : vector<1x128xf32>
    %96 = arith.mulf %95, %94 : vector<1x128xf32>
    %cst_28 = arith.constant 0.000000e+00 : f32
    %cst_29 = arith.constant 1.000000e+00 : f32
    %97 = vector.broadcast %cst_28 : f32 to vector<1x128xf32>
    %98 = arith.maximumf %97, %96 : vector<1x128xf32>
    %99 = vector.broadcast %cst_29 : f32 to vector<1x128xf32>
    %100 = arith.minimumf %99, %98 : vector<1x128xf32>
    %cst_30 = arith.constant 1.000000e+00 : f32
    %101 = vector.broadcast %cst_30 : f32 to vector<1x128xf32>
    %102 = arith.subf %101, %100 : vector<1x128xf32>
    %cst_31 = arith.constant 0.000000e+00 : f32
    %103 = vector.shape_cast %102 : vector<1x128xf32> to vector<1x128xf32>
    %104 = vector.broadcast %103 : vector<1x128xf32> to vector<16x128xf32>
    %105 = vector.broadcast %cst_31 : f32 to vector<16x128xf32>
    %106 = arith.select %74, %104, %105 : vector<16x128xi1>, vector<16x128xf32>
    %cst_32 = arith.constant 0.000000e+00 : f32
    %107 = vector.shape_cast %100 : vector<1x128xf32> to vector<1x128xf32>
    %108 = vector.broadcast %107 : vector<1x128xf32> to vector<16x128xf32>
    %109 = vector.broadcast %cst_32 : f32 to vector<16x128xf32>
    %110 = arith.select %76, %108, %109 : vector<16x128xi1>, vector<16x128xf32>
    %111 = arith.addf %106, %110 : vector<16x128xf32>
    %c0_33 = arith.constant 0 : index
    %c0_34 = arith.constant 0 : index
    %112 = vector.load %arg5[%c0_33, %c0_34] : memref<16x16xf32, #tpu.memory_space<vmem>>, vector<16x16xf32>
    %cst_35 = arith.constant dense<0.000000e+00> : vector<16x128xf32>
    %113 = tpu.matmul %112, %56, %cst_35 {dimension_numbers = #tpu.dot_dimension_numbers<[1], [0], [0], [1], [0, 0, 1, 1], [], []>, precision = #tpu.contract_precision<fp32>} : vector<16x16xf32>, vector<16x128xf32>, vector<16x128xf32> -> vector<16x128xf32>
    %114 = arith.mulf %113, %111 : vector<16x128xf32>
    %cst_36 = arith.constant dense<0.000000e+00> : vector<128xf32>
    %115 = vector.multi_reduction <add>, %114, %cst_36 [0] : vector<16x128xf32> to vector<128xf32>
    %116 = vector.shape_cast %115 : vector<128xf32> to vector<1x128xf32>
    %c0_37 = arith.constant 0 : index
    %c0_38 = arith.constant 0 : index
    %117 = vector.load %arg6[%c0_37, %c0_38] : memref<1x128xf32, #tpu.memory_space<vmem>>, vector<1x128xf32>
    tpu.vector_store %arg6[%c0_37, %c0_38], %116 {strides = array<i32>} : memref<1x128xf32, #tpu.memory_space<vmem>>, vector<1x128xf32>,
    return
  }
  func.func @transform_0(%arg0: i32) -> (i32, i32) {
    %c0_i32 = arith.constant 0 : i32
    %c0_i32_0 = arith.constant 0 : i32
    return %c0_i32, %arg0 : i32, i32
  }
  func.func @transform_1(%arg0: i32) -> (i32, i32) {
    %c0_i32 = arith.constant 0 : i32
    %c0_i32_0 = arith.constant 0 : i32
    return %c0_i32, %arg0 : i32, i32
  }
  func.func @transform_2(%arg0: i32) -> (i32, i32) {
    %c0_i32 = arith.constant 0 : i32
    %c0_i32_0 = arith.constant 0 : i32
    %c0_i32_1 = arith.constant 0 : i32
    return %c0_i32, %c0_i32_0 : i32, i32
  }
  func.func @transform_3(%arg0: i32) -> (i32, i32) {
    %c0_i32 = arith.constant 0 : i32
    %c0_i32_0 = arith.constant 0 : i32
    %c0_i32_1 = arith.constant 0 : i32
    return %c0_i32, %c0_i32_0 : i32, i32
  }
  func.func @transform_4(%arg0: i32) -> (i32, i32) {
    %c0_i32 = arith.constant 0 : i32
    %c0_i32_0 = arith.constant 0 : i32
    %c0_i32_1 = arith.constant 0 : i32
    return %c0_i32, %c0_i32_0 : i32, i32
  }
  func.func @transform_5(%arg0: i32) -> (i32, i32) {
    %c0_i32 = arith.constant 0 : i32
    %c0_i32_0 = arith.constant 0 : i32
    return %c0_i32, %arg0 : i32, i32
  }
}

</mosaic_0001>

<bundles_post_ra>
// kernel: tpu_custom_call.1
= control target key start
LH: loop header
LB: loop body
LE: loop exit
PB: predicated region body
PF: predicated region fallthrough
CT: control target
= control target key end

     0   :  { %10 = vsyncpa [#allocation3], 0  ;;  %s1491_s0 = inlined_call_operand.vmem [shape: f32[1,384], index: 0, kind: input, shape index: {}]   ;;  %s1492_s1 = inlined_call_operand.vmem [shape: f32[1,384], index: 1, kind: input, shape index: {}]   ;;  %s1493_s2 = inlined_call_operand.vmem [shape: f32[16,1], index: 2, kind: input, shape index: {}]   ;;  %s1494_s3 = inlined_call_operand.vmem [shape: f32[16,1], index: 3, kind: input, shape index: {}]   ;;  %s1495_s4 = inlined_call_operand.vmem [shape: f32[16,16], index: 4, kind: input, shape index: {}]   ;;  %s1496_s5 = inlined_call_operand.hbm [shape: f32[1,384], index: 5, kind: output, shape index: {}]  }
   0x1   :  { %12 = vsyncpa [#allocation3 + $0x1], 0  ;;  %s1253_s18 = smov 0   ;;  %s1255_s19 = smov 0  }
   0x2   :  { %s1257_s20 = smov 0   ;;  %s1259_s21 = smov 0  }
   0x3 LB: > { %s1274_s22 = sadd.s32 4294967295, %s1218_s21   ;;  %s992_s23 = sadd.s32 4294967294, %s1218_s21   ;;  %s1218_s21 = sphi %s1259_s21, %s1502_s21   ;;  %s1214_s20 = sphi %s1257_s20, %s1501_s20   ;;  %s1210_s19 = sphi %s1255_s19, %s1500_s19   ;;  %s1206_s18 = sphi %s1253_s18, %s1499_s18  }
   0x4   : > { %s1278_s24 = sadd.s32 1, %s1218_s21   ;;  %s140_s25 = sadd.s32 1, %s1214_s20 }
   0x5   : > { %s137_s26 = ssub.s32 %s1218_s21, %s1278_s24  ;;  %p150_p0 = scmp.ne.s32.totalorder %s1214_s20, %s1210_s19 }
   0x6   : > { %p138_p1 = scmp.eq.s32.totalorder %s137_s26, 0  ;;  %p151_p2 = scmp.eq.s32.totalorder %s1274_s22, 2 }
   0x7   : > { %p156_p3 = scmp.ne.s32.totalorder %s1210_s19, %s1206_s18  ;;  %p157_p4 = scmp.eq.s32.totalorder %s992_s23, 2 }
   0x8   : > { %s1289_s27 = scalar_select %p138_p1, %s1214_s20, %s140_s25  }
   0x9   : > { %p1291_p5 = por %p151_p2, %p150_p0  ;;  %p1295_p6 = por %p157_p4, %p156_p3 }
   0xa   : > { %p995_p7 = scmp.ge.s32.totalorder %s1218_s21, 1  ;;  %p196_p8 = scmp.lt.s32.totalorder %s1218_s21, 4 }
   0xc   : > { %p197_p9 = pnand %p995_p7, %p196_p8 }
   0xd   : > { %v232_v0 = vld [vmem:[%s1493_s2] sm:$0xff] (!%p197_p9)  ;;  %v1220_v1 = vmov (!%p197_p9), 0   ;;  %v233_v2 = vld [vmem:[%s1493_s2 + $0x8] sm:$0xff] (!%p197_p9)  ;;  %vm399_vm0 = vcmask (!%p197_p9), 130048   ;;  %p224_p10 = scmp.lt.s32.totalorder (!%p197_p9), %s1274_s22, 2  ;;  %v245_v12 = vlaneseq (!%p197_p9)  ;;  %v1221_v19 = vmov (!%p197_p9), 0.0  }
   0xe   : > { %200 = sbr.rel (%p197_p9) target bundleno = 490 (0x1ea), region = 40  ;;  %1150 = vset.pattern.permute.xlu0 (!%p197_p9), %v1220_v1  ;;  %1151 = vset.pattern.permute.xlu1 (!%p197_p9), %v1220_v1  ;;  %v316_v3 = vld [vmem:[%s1494_s3] sm:$0xff] (!%p197_p9)  ;;  %v317_v4 = vld [vmem:[%s1494_s3 + $0x8] sm:$0xff] (!%p197_p9)  ;;  %s222_s8 = sand.u32 (!%p197_p9), 1, %s1210_s19  }
   0xf   : > { %236 = vperm.xlu0 (!%p197_p9), %1150, %v232_v0   ;;  %320 = vperm.xlu1 (!%p197_p9), %1151, %v316_v3   ;;  %v397_v5 = vld [vmem:[%s1495_s4] sm:$0xff] (!%p197_p9)  ;;  %v1328_v13 = vshrl.u32 (!%p197_p9), %v245_v12, 7  ;;  %v398_v61 = vld [vmem:[%s1495_s4 + $0x8] sm:$0xff] (!%p197_p9)  ;;  %s1002_s9 = sshll.u32 (!%p197_p9), %s1274_s22, 4  ;;  %s223_s10 = scalar_lea.vmem (!%p197_p9), [#allocation2], %s222_s8 }
  0x10   : > { %v401_v6 = vsel (!%p197_p9), %vm399_vm0, %v397_v5, 0  ;;  %v404_v3 = vsel (!%p197_p9), %vm399_vm0, %v398_v61, 0  ;;  %s931_s11 = sshll.u32 (!%p197_p9), %s223_s10, 4  ;;  %s1449_s14 = scalar_lea.hbm (!%p197_p9), %s1496_s5, %s1002_s9  ;;  %s1451_s11 = int_to_ptr.vmem [resolvable:$true] %s931_s11 }
  0x11   : > { %v1317_v7 = vand.u32 (!%p197_p9), 4294901760, %v401_v6  ;;  %v1335_v14 = vsub.s32 (!%p197_p9), 0, %v1328_v13  ;;  %v1342_v31 = vadd.s32 (!%p197_p9), 8, %v1328_v13  ;;  %s1156_s16 = scalar_lea.vmem (!%p197_p9), %s1451_s11, 16 }
  0x12   : > { %p1157_p11 = scmp.ne.s32.totalorder (!%p197_p9), %s1451_s11, %s1156_s16 }
  0x13   : > { %241 = vperm.xlu0 (!%p197_p9), %1150, %v233_v2   ;;  %325 = vperm.xlu1 (!%p197_p9), %1151, %v317_v4   ;;  %v1320_v8 = vsub.f32 (!%p197_p9), %v401_v6, %v1317_v7 }
  0x14   : > { %p1158_p12 = pnand (!%p197_p9), %p1157_p11, %p1291_p5 }
  0x15   : > { %v475_v9 = vand.u32 4294901760, %v1320_v8  ;;  %s1326_s15 = scalar_select %p224_p10, %s1274_s22, 2 }
  0x16   : > { %p1159_p13 = pneg %p1158_p12  ;;  %s1222_s22 = smov [#allocation2]  }
  0x17   : > { %v476_v10 = vsub.f32 %v1320_v8, %v475_v9  ;;  %1054 = vmatprep.mubr.f32.mxu0 %v475_v9  ;;  %s226_s23 = scalar_lea.vmem %s1491_s0, %s1326_s15  ;;  %s229_s30 = scalar_lea.vmem %s1492_s1, %s1326_s15  ;;  %v1375_v9 = vand.u32 4294901760, %v404_v3 }
  0x18   : > { %v1337_v15 = vld [vmem:[%s226_s23] sm:$0x1]  ;;  %s919_s15 = scalar_lea.sflag [#allocation3], %s222_s8  ;;  %s1160_s17 = sshll.u32 %s1222_s22, 4  ;;  %s1161_s17 = int_to_ptr.vmem [resolvable:$false] %s1160_s17 }
  0x19   : > { %v477_v11 = vand.u32 4294901760, %v476_v10  ;;  %v248_v16 = vrot.slane %v1337_v15, %v1335_v14  ;;  %v1360_v54 = vld [vmem:[%s229_s30] sm:$0x1]  ;;  %s1162_s23 = scalar_lea.vmem %s1161_s17, 32  ;;  %p1163_p0 = scmp.lt.s32.totalorder %s1451_s11, %s1161_s17 }
  0x1a   : > { %v332_v55 = vrot.slane %v1360_v54, %v1335_v14  ;;  %p1164_p1 = scmp.lt.s32.totalorder %s1162_s23, %s1156_s16 }
  0x1b   : > { %1033 = vmatprep.mubr.f32.mxu1 %v477_v11 }
  0x1c   : > { %p1165_p2 = por %p1164_p1, %p1163_p0 }
  0x1e   : > { %p1166_p3 = pnand %p1165_p2, %p1159_p13 }
  0x8e   : > { %v237_v17 = vpop.permute.xlu0 %236  ;;  %v1364_v56 = vpop.permute.xlu1 %320 }
  0x8f   : > { %vm250_vm1 = vcmp.gt.f32.partialorder %v237_v17, %v248_v16  ;;  %vm334_vm7 = vcmp.gt.f32.partialorder %v1364_v56, %v332_v55 }
  0x90   : > { %v996_v20 = vsel %vm250_vm1, 1.0, %v1221_v19  ;;  %v999_v58 = vsel %vm334_vm7, 1.0, %v1221_v19 }
  0x92   : > { %v242_v18 = vpop.permute.xlu0 %241  ;;  %v1367_v59 = vpop.permute.xlu1 %325 }
  0x93   : > { %vm251_vm2 = vcmp.gt.f32.partialorder %v242_v18, %v248_v16  ;;  %vm335_vm8 = vcmp.gt.f32.partialorder %v1367_v59, %v332_v55 }
  0x94   : > { %v997_v21 = vsel %vm251_vm2, 1.0, %v1221_v19  ;;  %v1000_v62 = vsel %vm335_vm8, 1.0, %v1221_v19 }
  0x95   : > { %v256_v22 = vadd.f32 %v997_v21, %v996_v20  ;;  %v340_v0 = vadd.f32 %v1000_v62, %v999_v58 }
  0x97   : > { %v257_v23 = vrot.slane %v256_v22, 4  ;;  %v341_v4 = vrot.slane %v340_v0, 4 }
  0x99   : > { %v258_v24 = vadd.f32 %v257_v23, %v256_v22  ;;  %v342_v6 = vadd.f32 %v341_v4, %v340_v0 }
  0x9b   : > { %v259_v25 = vrot.slane %v258_v24, 2  ;;  %v343_v11 = vrot.slane %v342_v6, 2 }
  0x9d   : > { %v260_v26 = vadd.f32 %v259_v25, %v258_v24  ;;  %v344_v16 = vadd.f32 %v343_v11, %v342_v6 }
  0x9f   : > { %v261_v27 = vrot.slane %v260_v26, 1  ;;  %v345_v20 = vrot.slane %v344_v16, 1 }
  0xa1   : > { %v262_v28 = vadd.f32 %v261_v27, %v260_v26  ;;  %v346_v21 = vadd.f32 %v345_v20, %v344_v16 }
  0xa3   : > { %v263_v29 = vmax.f32 %v262_v28, 1.0  ;;  %v347_v27 = vmax.f32 %v346_v21, 1.0 }
  0xa5   : > { %v264_v30 = vmin.f32 %v263_v29, 15.0 }
  0xa7   : > { %v1105_v32 = vtrunc.f32 %v264_v30  ;;  %v348_v30 = vmin.f32 %v347_v27, 15.0 }
  0xa9   : > { %v1106_v33 = vcvt.f32.s32 %v1105_v32 }
  0xab   : > { %v998_v34 = vadd.s32 4294967295, %v1106_v33  ;;  %vm272_vm3 = vcmp.eq.s32.totalorder %v1328_v13, %v1106_v33  ;;  %vm273_vm4 = vcmp.eq.s32.totalorder %v1342_v31, %v1106_v33 }
  0xac   : > { %v283_v35 = vsel %vm272_vm3, %v237_v17, 0.0  ;;  %v284_v36 = vsel %vm273_vm4, %v242_v18, 0.0 }
  0xad   : > { %vm270_vm5 = vcmp.eq.s32.totalorder %v1328_v13, %v998_v34  ;;  %vm271_vm6 = vcmp.eq.s32.totalorder %v1342_v31, %v998_v34  ;;  %v285_v37 = vadd.f32 %v284_v36, %v283_v35 }
  0xae   : > { %v274_v38 = vsel %vm270_vm5, %v237_v17, 0.0  ;;  %v275_v39 = vsel %vm271_vm6, %v242_v18, 0.0  ;;  %v1378_v17 = vsub.f32 %v404_v3, %v1375_v9 }
  0xaf   : > { %v276_v40 = vadd.f32 %v275_v39, %v274_v38  ;;  %v286_v41 = vrot.slane %v285_v37, 4 }
  0xb0   : > { %v485_v23 = vand.u32 4294901760, %v1378_v17 }
  0xb1   : > { %v277_v42 = vrot.slane %v276_v40, 4  ;;  %v287_v43 = vadd.f32 %v286_v41, %v285_v37  ;;  %v1107_v37 = vtrunc.f32 %v348_v30 }
  0xb2   : > { %v486_v36 = vsub.f32 %v1378_v17, %v485_v23 }
  0xb3   : > { %v278_v44 = vadd.f32 %v277_v42, %v276_v40  ;;  %v288_v45 = vrot.slane %v287_v43, 2  ;;  %v1392_v41 = vcvt.f32.s32 %v1107_v37 }
  0xb4   : > { %v487_v34 = vand.u32 4294901760, %v486_v36 }
  0xb5   : > { %v279_v46 = vrot.slane %v278_v44, 2  ;;  %v289_v47 = vadd.f32 %v288_v45, %v287_v43  ;;  %v1395_v43 = vadd.s32 4294967295, %v1392_v41  ;;  %vm353_vm9 = vcmp.eq.s32.totalorder %v1328_v13, %v1392_v41 }
  0xb6   : > { %vm354_vm10 = vcmp.eq.s32.totalorder %v1342_v31, %v1392_v41 }
  0xb7   : > { %v280_v48 = vadd.f32 %v279_v46, %v278_v44  ;;  %v290_v49 = vrot.slane %v289_v47, 1  ;;  %vm351_vm11 = vcmp.eq.s32.totalorder %v1328_v13, %v1395_v43  ;;  %vm352_vm12 = vcmp.eq.s32.totalorder %v1342_v31, %v1395_v43 }
  0xb9   : > { %v281_v50 = vrot.slane %v280_v48, 1  ;;  %v291_v52 = vadd.f32 %v290_v49, %v289_v47  ;;  %v364_v47 = vsel %vm353_vm9, %v1364_v56, 0.0 }
  0xbb   : > { %v282_v51 = vadd.f32 %v281_v50, %v280_v48  ;;  %v365_v48 = vsel %vm354_vm10, %v1367_v59, 0.0 }
  0xbc   : > { %v366_v55 = vadd.f32 %v365_v48, %v364_v47 }
  0xbd   : > { %v292_v53 = vsub.f32 %v282_v51, %v291_v52  ;;  %v297_v2 = vsub.f32 %v282_v51, %v1337_v15  ;;  %v355_v51 = vsel %vm351_vm11, %v1364_v56, 0.0  ;;  %v356_v52 = vsel %vm352_vm12, %v1367_v59, 0.0 }
  0xbf   : > { %1152 = vrcp.f32 %v292_v53 }
  0xc9   : > { %v1153_v57 = vpop.eup %1152 }
  0xca   : > { %v294_v60 = vmul.f32 %v1153_v57, %v292_v53  ;;  %v357_v53 = vadd.f32 %v356_v52, %v355_v51 }
  0xcc   : > { %v295_v63 = vsub.f32 2.0, %v294_v60  ;;  %v358_v58 = vrot.slane %v357_v53, 4  ;;  %v367_v60 = vrot.slane %v366_v55, 4 }
  0xce   : > { %v296_v1 = vmul.f32 %v1153_v57, %v295_v63  ;;  %v359_v56 = vadd.f32 %v358_v58, %v357_v53  ;;  %v368_v62 = vadd.f32 %v367_v60, %v366_v55 }
  0xd0   : > { %v298_v5 = vmul.f32 %v297_v2, %v296_v1  ;;  %v360_v63 = vrot.slane %v359_v56, 2  ;;  %v369_v59 = vrot.slane %v368_v62, 2 }
  0xd2   : > { %v299_v10 = vmax.f32 %v298_v5, 0.0  ;;  %v361_v0 = vadd.f32 %v360_v63, %v359_v56  ;;  %v370_v1 = vadd.f32 %v369_v59, %v368_v62 }
  0xd4   : > { %v300_v12 = vmin.f32 %v299_v10, 1.0  ;;  %v362_v2 = vrot.slane %v361_v0, 1  ;;  %v371_v3 = vrot.slane %v370_v1, 1 }
  0xd6   : > { %v301_v18 = vsub.f32 1.0, %v300_v12  ;;  %v311_v19 = vrot.slane %v300_v12, %v1335_v14  ;;  %v363_v4 = vadd.f32 %v362_v2, %v361_v0  ;;  %v372_v5 = vadd.f32 %v371_v3, %v370_v1 }
  0xd8   : > { %v305_v15 = vrot.slane %v301_v18, %v1335_v14  ;;  %v312_v22 = vsel %vm272_vm3, %v311_v19, 0.0  ;;  %v313_v26 = vsel %vm273_vm4, %v311_v19, 0.0  ;;  %v373_v6 = vsub.f32 %v363_v4, %v372_v5 }
  0xd9   : > { %v378_v16 = vsub.f32 %v363_v4, %v1360_v54 }
  0xda   : > { %v306_v24 = vsel %vm270_vm5, %v305_v15, 0.0  ;;  %v307_v25 = vsel %vm271_vm6, %v305_v15, 0.0  ;;  %1154 = vrcp.f32 %v373_v6 }
  0xdb   : > { %v314_v28 = vadd.f32 %v312_v22, %v306_v24  ;;  %v315_v29 = vadd.f32 %v313_v26, %v307_v25 }
  0xdd   : > { %v407_v32 = vand.u32 4294901760, %v314_v28  ;;  %v410_v35 = vand.u32 4294901760, %v315_v29 }
  0xdf   : > { %v1071_v38 = vpack.c.bf16 %v410_v35, %v407_v32  ;;  %v495_v39 = vsub.f32 %v314_v28, %v407_v32  ;;  %v502_v40 = vsub.f32 %v315_v29, %v410_v35 }
  0xe1   : > { %1072 = vmatprep.subr.bf16.mxu1 %v1071_v38  ;;  %1084 = vmatprep.subr.bf16.mxu0 %v1071_v38  ;;  %v496_v42 = vand.u32 4294901760, %v495_v39  ;;  %v503_v33 = vand.u32 4294901760, %v502_v40  ;;  %v1079_v61 = vpack.c.bf16 %v502_v40, %v495_v39 }
  0xe2   : > { %1074 = vmatpush3.bf16.msra.mxu1 %v1071_v38  ;;  %1086 = vmatpush3.bf16.msra.mxu0 %v1071_v38 }
  0xe3   : > { %v1087_v44 = vpack.c.bf16 %v503_v33, %v496_v42  ;;  %v497_v45 = vsub.f32 %v495_v39, %v496_v42  ;;  %v504_v46 = vsub.f32 %v502_v40, %v503_v33 }
  0xe4   : > { %v1155_v10 = vpop.eup %1154 }
  0xe5   : > { %1034 = vmatmul.mubr.f32.vlgmr.msra.gmra.mrb[0].mxu1 %v487_v34  ;;  %1055 = vmatmul.mubr.f32.vlgmr.msra.gmra.mrb[0].mxu0 %v485_v23  ;;  %v498_v49 = vand.u32 4294901760, %v497_v45  ;;  %v505_v50 = vand.u32 4294901760, %v504_v46  ;;  %v375_v11 = vmul.f32 %v1155_v10, %v373_v6 }
  0xe6   : > { %1088 = vmatprep.subr.bf16.mxu0 %v1087_v44  ;;  %1040 = vmatprep.mubr.f32.mxu1 %v1317_v7 }
  0xe7   : > { %1090 = vmatpush3.bf16.msra.mxu0 %v1087_v44  ;;  %v1075_v57 = vpack.c.bf16 %v505_v50, %v498_v49  ;;  %1061 = vmatprep.mubr.f32.mxu0 %v1317_v7  ;;  %v376_v12 = vsub.f32 2.0, %v375_v11 }
  0xe8   : > { %1092 = vmatprep.subr.bf16.mxu0 %v1071_v38 }
  0xe9   : > { %1076 = vmatprep.subr.bf16.mxu1 %v1075_v57  ;;  %v377_v18 = vmul.f32 %v1155_v10, %v376_v12 }
  0xea   : > { %1078 = vmatpush3.bf16.msra.mxu1 %v1075_v57 }
  0xeb   : > { %1080 = vmatprep.subr.bf16.mxu1 %v1079_v61  ;;  %v379_v19 = vmul.f32 %v378_v16, %v377_v18 }
  0xed   : > { %1041 = vmatmul.mubr.f32.vlgmr.msra.gmra.mrb[0].mxu1 %v1375_v9  ;;  %1062 = vmatmul.mubr.f32.vlgmr.msra.gmra.mrb[0].mxu0 %v1375_v9 }
  0xee   : > { %1094 = vmatpush3.bf16.msra.mxu0 %v1071_v38  ;;  %1082 = vmatpush3.bf16.msra.mxu1 %v1079_v61 }
  0xef   : > { %1047 = vmatprep.mubr.f32.mxu1 %v1320_v8  ;;  %1068 = vmatprep.mubr.f32.mxu0 %v1317_v7  ;;  %v380_v8 = vmax.f32 %v379_v19, 0.0 }
  0xf1   : > { %v381_v20 = vmin.f32 %v380_v8, 1.0 }
  0xf3   : > { %v382_v7 = vsub.f32 1.0, %v381_v20  ;;  %v392_v15 = vrot.slane %v381_v20, %v1335_v14 }
  0xf5   : > { %1048 = vmatmul.mubr.f32.vlgmr.msra.gmra.mrb[0].mxu1 %v1378_v17  ;;  %1069 = vmatmul.mubr.f32.vlgmr.msra.gmra.mrb[0].mxu0 %v1375_v9  ;;  %v386_v21 = vrot.slane %v382_v7, %v1335_v14  ;;  %v394_v17 = vsel %vm354_vm10, %v392_v15, 0.0  ;;  %v393_v22 = vsel %vm353_vm9, %v392_v15, 0.0 }
  0xf7   : > { %v388_v9 = vsel %vm352_vm12, %v386_v21, 0.0  ;;  %v387_v54 = vsel %vm351_vm11, %v386_v21, 0.0 }
  0xf8   : > { %v396_v23 = vadd.f32 %v394_v17, %v388_v9  ;;  %v395_v14 = vadd.f32 %v393_v22, %v387_v54 }
 0x1c8   : > { %v1049_v24 = vpop.f32.mrb[0].mxu1  ;;  %v1070_v25 = vpop.f32.mrb[0].mxu0 }
 0x1c9   : > { %v1095_v26 = vadd.f32 %v1070_v25, %v1049_v24  ;;  %v652_v27 = vpop.f32.mrb[1].mxu1  ;;  %v898_v28 = vpop.f32.mrb[1].mxu0 }
 0x1ca   : > { %v1096_v29 = vadd.f32 %v898_v28, %v652_v27 }
 0x1cb   : > { %v909_v31 = vmul.f32 %v1095_v26, %v396_v23 }
 0x1cc   : > { %v908_v30 = vmul.f32 %v1096_v29, %v395_v14 }
 0x1ce   : > { %v910_v32 = vadd.f32 %v909_v31, %v908_v30 }
 0x1d0   : > { %v911_v35 = vrot.slane %v910_v32, 4 }
 0x1d2   : > { %v912_v36 = vadd.f32 %v911_v35, %v910_v32 }
 0x1d4   : > { %v913_v37 = vrot.slane %v912_v36, 2 }
 0x1d6   : > { %v914_v38 = vadd.f32 %v913_v37, %v912_v36 }
 0x1d8   : > { %v915_v13 = vrot.slane %v914_v38, 1 }
 0x1da   : > { %v916_v39 = vadd.f32 %v915_v13, %v914_v38 }
 0x1dc   : > { %917 = vst [vmem:[%s223_s10] sm:$0x1] %v916_v39 }
 0x1dd   : > { %1169 = shalt.err (!%p1166_p3)
}
 0x1de   : > { %s1170_s25 = scalar_lea.hbm %s1449_s14, 16  ;;  %s1174_s6 = scalar_lea.hbm %s1496_s5, 48 }
 0x1df   : > { %p1171_p4 = scmp.ne.s32.totalorder %s1449_s14, %s1170_s25  ;;  %p1175_p9 = scmp.lt.u32.totalorder %s1449_s14, %s1496_s5 }
 0x1e0   : > { %p1176_p10 = scmp.lt.u32.totalorder %s1174_s6, %s1170_s25  ;;  %p1178_p12 = scmp.lt.u32.totalorder %s1170_s25, %s1449_s14 }
 0x1e1   : > { %p1172_p7 = pnand %p1171_p4, %p1291_p5 }
 0x1e2   : > { %p1177_p11 = por %p1176_p10, %p1175_p9 }
 0x1e3   : > { %p1173_p8 = pneg %p1172_p7 }
 0x1e4   : > { %p1179_p13 = por %p1178_p12, %p1177_p11 }
 0x1e6   : > { %p1180_p0 = pnand %p1179_p13, %p1173_p8 }
 0x1e8   : > { %1183 = shalt.err (!%p1180_p0)
}
 0x1e9   : > { %1109 = dma.vmem_to_hbm [thread:$0]  (%p1291_p5), %s1451_s11, 16, %s1449_s14, %s919_s15  }
 0x1ea PF: > { %p1115_p1 = scmp.ge.s32.totalorder %s1218_s21, 2  ;;  %s943_s9 = sand.u32 1, %s1206_s18  }
 0x1eb   : > { %s944_s10 = scalar_lea.sflag [#allocation3], %s943_s9 }
 0x1ec   : > { %p1112_p2 = pnand %p1115_p1, %p1295_p6 }
 0x1ee   : > { %1201 = dma.done.wait (!%p1112_p2), %s944_s10, 16  }
 0x1ef   : > { %1203 = vsyncadd (!%p1112_p2), %s944_s10, 4294967280  ;;  %p15_p3 = scmp.ge.s32.totalorder %s1278_s24, 5   ;;  %s1499_s18 = smov %s1210_s19 }
 0x1f0   : > { %s1500_s19 = smov %s1214_s20  ;;  %s1501_s20 = smov %s1289_s27 }
 0x1f1   : > { %s1502_s21 = smov %s1278_s24  ;;  %17 = sbr.rel (!%p15_p3) target bundleno = 3 (0x3), region = 78 }
 0x1f8   :  { %948 = vsyncpa [#allocation3], 1 }
 0x1f9   :  { %950 = vsyncpa [#allocation3 + $0x1], 1 }

</bundles_post_ra>
